<compile_context>
chip_gen: v7x
topology: tpu7x:2x2x1
jax: 0.10.0
libtpu: 0.0.40
codegen_flags: <defaults>
</compile_context>

<pallas_src>
import functools
import numpy as np

import jax
import jax.numpy as jnp
from jax import lax
from jax.experimental import pallas as pl
from jax.experimental.pallas import tpu as pltpu

# ---------------- config (small, consistent with the module) ----------------
BATCH = 8        # batch_size
FEAT = 32        # representation dim of zis / zjs
CHANNELS = 4     # anchor channels (averaged over in compute_frequency_distances)
TIME = 64        # anchor time length (<= 256 -> single-segment Welch)
FS = 128
TEMPERATURE = 0.2
ALPHA = 2.0
K_HARD = 5

_BANDS = (
    ("delta", 0.5, 4.0),
    ("theta", 4.0, 8.0),
    ("alpha", 8.0, 13.0),
    ("beta", 13.0, 30.0),
    ("gamma", 30.0, 45.0),
)


# --------------------------- fused Pallas kernel -----------------------------
def _fused_ntxent_kernel(zjs_ref, zis_ref, hard_cols_ref, loss_ref, *,
                         batch_size, temperature, alpha):
    """cosine-sim + hard-neg scaling + NT-Xent CE (label 0) in one pass.

    zjs_ref, zis_ref : (B, D) f32 in VMEM
    hard_cols_ref    : (2B, K_HARD) int32 in VMEM -- full-matrix column indices
                       of hard negatives per row (never the diag / positive col)
    loss_ref         : (1, 1) f32 in SMEM -- scalar loss.
    """
    n = 2 * batch_size

    # (2B, D) stack formed in-kernel: rows 0..B-1 = zjs, rows B..2B-1 = zis.
    x = jnp.concatenate([zjs_ref[...], zis_ref[...]], axis=0)

    # Row normalization before the matmul.  torch.nn.CosineSimilarity clamps
    # ||x||*||y|| at eps=1e-8; per-row clamp of ||x||^2 at 1e-16 matches it
    # except for pathological near-zero rows.  rsqrt lands on the EUP slot.
    sumsq = jnp.sum(x * x, axis=-1, keepdims=True)               # (2B, 1)
    xn = x * lax.rsqrt(jnp.maximum(sumsq, jnp.float32(1e-16)))

    # One MXU op, contracting the last dims of both operands (no transpose).
    # f32 operands kept for exact parity with the reference; cast xn to bf16
    # here (keeping preferred_element_type=f32) only if 2B/D scale up.
    sim = lax.dot_general(xn, xn, (((1,), (1,)), ((), ())),
                          preferred_element_type=jnp.float32)    # (2B, 2B)

    rows = lax.broadcasted_iota(jnp.int32, (n, n), 0)
    cols = lax.broadcasted_iota(jnp.int32, (n, n), 1)
    is_diag = rows == cols
    pos_col = jnp.where(rows < batch_size, rows + batch_size, rows - batch_size)
    is_pos = cols == pos_col                                     # positive column per row

    # Hard-negative scaling rebuilt from K_HARD column indices, with the
    # 1/temperature factor folded in so `logits = sim * scale` is the only
    # full-tile multiply.  Hard columns never hit the diag / positive columns.
    inv_t = jnp.float32(1.0 / temperature)
    hard_t = jnp.float32((1.0 + alpha) / temperature)
    hc = hard_cols_ref[...]                                      # (2B, K) int32
    scale = jnp.full((n, n), inv_t, jnp.float32)
    for j in range(hc.shape[1]):                                 # K_HARD compares, unrolled
        scale = jnp.where(cols == hc[:, j:j + 1], hard_t, scale)

    logits = sim * scale                                         # (2B, 2B)

    # Masked LSE over the full row == LSE over [positive | negatives] of the
    # reference: only the self-similarity column is excluded; the positive
    # column carries scale 1/T and IS the other correlated-mask column.
    masked = jnp.where(is_diag, jnp.float32(-jnp.inf), logits)
    m = jnp.max(masked, axis=-1, keepdims=True)
    lse = m + jnp.log(jnp.sum(jnp.exp(masked - m), axis=-1, keepdims=True))  # (2B, 1)

    # CrossEntropy(reduction='sum') at label 0, divided by 2B.  Positive logit
    # comes from the already-masked matrix (is_pos is never on the diag).
    pos_sum = jnp.sum(jnp.where(is_pos, masked, jnp.float32(0.0)))
    loss_ref[0, 0] = (jnp.sum(lse) - pos_sum) / jnp.float32(n)


def fused_ntxent_loss(zjs, zis, hard_cols, *, batch_size, temperature, alpha):
    # TODO(synk): if 2B ever reaches thousands, tile rows into (tm, 2B) blocks
    # over a "parallel" row grid with an online LSE in VMEM scratch, sizing tm
    # against v7x's 64 MiB VMEM first and setting vmem_limit_bytes explicitly.
    kern = functools.partial(_fused_ntxent_kernel, batch_size=batch_size,
                             temperature=temperature, alpha=alpha)
    out = pl.pallas_call(
        kern,
        out_shape=jax.ShapeDtypeStruct((1, 1), jnp.float32),
        in_specs=[pl.BlockSpec(memory_space=pltpu.MemorySpace.VMEM),
                  pl.BlockSpec(memory_space=pltpu.MemorySpace.VMEM),
                  pl.BlockSpec(memory_space=pltpu.MemorySpace.VMEM)],
        out_specs=pl.BlockSpec(memory_space=pltpu.MemorySpace.SMEM),
    )(zjs, zis, hard_cols)
    return out[0, 0]


# ------------------------------ plain-JAX glue -------------------------------
def welch_psd_single_segment(x, fs):
    # TODO(synk): FFT has no clean Pallas TPU equivalent; Welch PSD stays in plain JAX.
    # Matches scipy.signal.welch defaults for signals with T <= 256 (one segment):
    # hann(sym=False) window, detrend='constant', one-sided density scaling.
    b, t = x.shape
    assert t <= 256, "single-segment Welch assumed (nperseg == signal length)"
    n = np.arange(t)
    win = 0.5 - 0.5 * np.cos(2.0 * np.pi * n / t)
    xd = x - jnp.mean(x, axis=1, keepdims=True)
    X = jnp.fft.rfft(xd * win[None, :], axis=1)
    scale = 1.0 / (fs * np.sum(win ** 2))
    psd = (X.real ** 2 + X.imag ** 2) * scale
    nf = t // 2 + 1
    mult = np.ones(nf)
    if t % 2 == 0:
        mult[1:-1] = 2.0
    else:
        mult[1:] = 2.0
    psd = psd * mult[None, :]
    f = np.fft.rfftfreq(t, 1.0 / fs)
    return f, psd


def _trapz_rows(y, x):
    # y: (B, n) jnp, x: (n,) static numpy frequencies
    if x.size < 2:
        return jnp.zeros((y.shape[0],), jnp.float32)
    dx = (x[1:] - x[:-1]).astype(np.float32)
    return jnp.sum(0.5 * (y[:, 1:] + y[:, :-1]) * dx[None, :], axis=1)


def compute_frequency_distances(anchors, fs):
    avg = jnp.mean(anchors, axis=1)                              # (B, T)
    f, psd = welch_psd_single_segment(avg, fs)
    band_powers = []
    for _, lo, hi in _BANDS:
        cols = np.where(np.logical_and(f >= lo, f <= hi))[0]
        band_powers.append(_trapz_rows(psd[:, cols], f[cols]))
    bp = jnp.stack(band_powers, axis=1).astype(jnp.float32)      # (B, 5)
    bp = bp / jnp.sum(bp, axis=1, keepdims=True)
    diff = bp[:, None, :] - bp[None, :, :]
    return jnp.sqrt(jnp.sum(diff * diff, axis=-1))               # (B, B) euclidean cdist


def get_intermediate_indices(dist, k, lower_percentile=25, upper_percentile=75):
    # TODO(synk): quantile / top-k hard-negative selection stays in plain JAX.
    lo = jnp.quantile(dist, lower_percentile / 100.0, axis=1)
    hi = jnp.quantile(dist, upper_percentile / 100.0, axis=1)
    mask = (dist >= lo[:, None]) & (dist <= hi[:, None])
    masked = jnp.where(mask, dist, -jnp.inf)
    _, idx = jax.lax.top_k(masked, k)
    return idx                                                   # (B, k)


@functools.partial(jax.jit, static_argnames=("batch_size", "temperature",
                                             "alpha", "k_hard", "fs"))
def frequency_aware_ntxent_loss(zis, zjs, anchors, *, batch_size, temperature,
                                alpha, k_hard, fs):
    dist = compute_frequency_distances(anchors, fs)
    hard_idx = get_intermediate_indices(dist, k_hard).astype(jnp.int32)  # (B, k)

    # The PyTorch reference indexes hard negatives by COLUMN POSITION in the
    # per-row width-(2B-2) "negatives" array (i.e. after the correlated-mask
    # column permutation), identically for rows i and i+B.  That permutation is
    # closed-form: row r excludes columns {a, a+B} (a = r mod B), so the column
    # at position idx is idx + [idx >= a] + [idx >= a+B-1].  No gather/scatter.
    a = jnp.arange(batch_size, dtype=jnp.int32)[:, None]                 # (B, 1)
    hard_cols_half = (hard_idx
                      + (hard_idx >= a).astype(jnp.int32)
                      + (hard_idx >= a + batch_size - 1).astype(jnp.int32))
    hard_cols = jnp.concatenate([hard_cols_half, hard_cols_half], axis=0)  # (2B, k)

    return fused_ntxent_loss(zjs.astype(jnp.float32), zis.astype(jnp.float32),
                             hard_cols, batch_size=batch_size,
                             temperature=temperature, alpha=alpha)


# ----------------------------------- main ------------------------------------
if __name__ == "__main__":
    key = jax.random.PRNGKey(0)
    k1, k2, k3 = jax.random.split(key, 3)
    zis = jax.random.normal(k1, (BATCH, FEAT), dtype=jnp.float32)
    zjs = jax.random.normal(k2, (BATCH, FEAT), dtype=jnp.float32)
    anchors = jax.random.normal(k3, (BATCH, CHANNELS, TIME), dtype=jnp.float32)

    loss = frequency_aware_ntxent_loss(
        zis, zjs, anchors,
        batch_size=BATCH, temperature=TEMPERATURE,
        alpha=ALPHA, k_hard=K_HARD, fs=FS,
    )
    jax.block_until_ready(loss)
    print("KERNEL_OK")
</pallas_src>

<mosaic_0001>
module attributes {stable_mosaic.version = 11 : i64} {
  func.func @_fused_ntxent_kernel(%arg0: memref<8x32xf32, #tpu.memory_space<vmem>>, %arg1: memref<8x32xf32, #tpu.memory_space<vmem>>, %arg2: memref<16x5xi32, #tpu.memory_space<vmem>>, %arg3: memref<1x1xf32, #tpu.memory_space<smem>>) attributes {dimension_semantics = [], scalar_prefetch = 0 : i64, scratch_operands = 0 : i64, tpu.core_type = #tpu.core_type<tc>} {
    %c0 = arith.constant 0 : index
    %c0_0 = arith.constant 0 : index
    %0 = vector.load %arg0[%c0, %c0_0] : memref<8x32xf32, #tpu.memory_space<vmem>>, vector<8x32xf32>
    %c0_1 = arith.constant 0 : index
    %c0_2 = arith.constant 0 : index
    %1 = vector.load %arg1[%c0_1, %c0_2] : memref<8x32xf32, #tpu.memory_space<vmem>>, vector<8x32xf32>
    %2 = tpu.concatenate %0, %1 in 0 : vector<8x32xf32>, vector<8x32xf32> -> vector<16x32xf32>
    %3 = arith.mulf %2, %2 : vector<16x32xf32>
    %cst = arith.constant dense<0.000000e+00> : vector<16xf32>
    %4 = vector.multi_reduction <add>, %3, %cst [1] : vector<16x32xf32> to vector<16xf32>
    %5 = vector.shape_cast %4 : vector<16xf32> to vector<16x1xf32>
    %cst_3 = arith.constant 1.000000e-16 : f32
    %6 = vector.broadcast %cst_3 : f32 to vector<16x1xf32>
    %7 = arith.maximumf %5, %6 : vector<16x1xf32>
    %8 = math.rsqrt %7 : vector<16x1xf32>
    %9 = vector.broadcast %8 : vector<16x1xf32> to vector<16x32xf32>
    %10 = arith.mulf %2, %9 : vector<16x32xf32>
    %cst_4 = arith.constant dense<0.000000e+00> : vector<16x16xf32>
    %11 = tpu.matmul %10, %10, %cst_4 {dimension_numbers = #tpu.dot_dimension_numbers<[1], [1], [0], [0], [0, 0, 1, 0], [], []>} : vector<16x32xf32>, vector<16x32xf32>, vector<16x16xf32> -> vector<16x16xf32>
    %12 = tpu.iota {dimensions = array<i32: 0>} : vector<16x16xi32>
    %13 = tpu.iota {dimensions = array<i32: 1>} : vector<16x16xi32>
    %14 = arith.cmpi eq, %12, %13 : vector<16x16xi32>
    %c8_i32 = arith.constant 8 : i32
    %15 = vector.broadcast %c8_i32 : i32 to vector<16x16xi32>
    %16 = arith.cmpi slt, %12, %15 : vector<16x16xi32>
    %c8_i32_5 = arith.constant 8 : i32
    %17 = vector.broadcast %c8_i32_5 : i32 to vector<16x16xi32>
    %18 = arith.addi %12, %17 : vector<16x16xi32>
    %c8_i32_6 = arith.constant 8 : i32
    %19 = vector.broadcast %c8_i32_6 : i32 to vector<16x16xi32>
    %20 = arith.subi %12, %19 : vector<16x16xi32>
    %21 = arith.select %16, %18, %20 : vector<16x16xi1>, vector<16x16xi32>
    %22 = arith.cmpi eq, %13, %21 : vector<16x16xi32>
    %c0_7 = arith.constant 0 : index
    %c0_8 = arith.constant 0 : index
    %23 = vector.load %arg2[%c0_7, %c0_8] : memref<16x5xi32, #tpu.memory_space<vmem>>, vector<16x5xi32>
    %cst_9 = arith.constant 5.000000e+00 : f32
    %24 = vector.broadcast %cst_9 : f32 to vector<16x16xf32>
    %25 = vector.extract_strided_slice %23 {offsets = [0, 0], sizes = [16, 1], strides = [1, 1]} : vector<16x5xi32> to vector<16x1xi32>
    %26 = vector.broadcast %25 : vector<16x1xi32> to vector<16x16xi32>
    %27 = arith.cmpi eq, %13, %26 : vector<16x16xi32>
    %cst_10 = arith.constant 1.500000e+01 : f32
    %28 = vector.broadcast %cst_10 : f32 to vector<16x16xf32>
    %29 = arith.select %27, %28, %24 : vector<16x16xi1>, vector<16x16xf32>
    %30 = vector.extract_strided_slice %23 {offsets = [0, 1], sizes = [16, 1], strides = [1, 1]} : vector<16x5xi32> to vector<16x1xi32>
    %31 = vector.broadcast %30 : vector<16x1xi32> to vector<16x16xi32>
    %32 = arith.cmpi eq, %13, %31 : vector<16x16xi32>
    %cst_11 = arith.constant 1.500000e+01 : f32
    %33 = vector.broadcast %cst_11 : f32 to vector<16x16xf32>
    %34 = arith.select %32, %33, %29 : vector<16x16xi1>, vector<16x16xf32>
    %35 = vector.extract_strided_slice %23 {offsets = [0, 2], sizes = [16, 1], strides = [1, 1]} : vector<16x5xi32> to vector<16x1xi32>
    %36 = vector.broadcast %35 : vector<16x1xi32> to vector<16x16xi32>
    %37 = arith.cmpi eq, %13, %36 : vector<16x16xi32>
    %cst_12 = arith.constant 1.500000e+01 : f32
    %38 = vector.broadcast %cst_12 : f32 to vector<16x16xf32>
    %39 = arith.select %37, %38, %34 : vector<16x16xi1>, vector<16x16xf32>
    %40 = vector.extract_strided_slice %23 {offsets = [0, 3], sizes = [16, 1], strides = [1, 1]} : vector<16x5xi32> to vector<16x1xi32>
    %41 = vector.broadcast %40 : vector<16x1xi32> to vector<16x16xi32>
    %42 = arith.cmpi eq, %13, %41 : vector<16x16xi32>
    %cst_13 = arith.constant 1.500000e+01 : f32
    %43 = vector.broadcast %cst_13 : f32 to vector<16x16xf32>
    %44 = arith.select %42, %43, %39 : vector<16x16xi1>, vector<16x16xf32>
    %45 = vector.extract_strided_slice %23 {offsets = [0, 4], sizes = [16, 1], strides = [1, 1]} : vector<16x5xi32> to vector<16x1xi32>
    %46 = vector.broadcast %45 : vector<16x1xi32> to vector<16x16xi32>
    %47 = arith.cmpi eq, %13, %46 : vector<16x16xi32>
    %cst_14 = arith.constant 1.500000e+01 : f32
    %48 = vector.broadcast %cst_14 : f32 to vector<16x16xf32>
    %49 = arith.select %47, %48, %44 : vector<16x16xi1>, vector<16x16xf32>
    %50 = arith.mulf %11, %49 : vector<16x16xf32>
    %cst_15 = arith.constant 0xFF800000 : f32
    %51 = vector.broadcast %cst_15 : f32 to vector<16x16xf32>
    %52 = arith.select %14, %51, %50 : vector<16x16xi1>, vector<16x16xf32>
    %cst_16 = arith.constant dense<0xFF800000> : vector<16xf32>
    %53 = vector.multi_reduction <maximumf>, %52, %cst_16 [1] : vector<16x16xf32> to vector<16xf32>
    %54 = vector.shape_cast %53 : vector<16xf32> to vector<16x1xf32>
    %55 = vector.broadcast %54 : vector<16x1xf32> to vector<16x16xf32>
    %56 = arith.subf %52, %55 : vector<16x16xf32>
    %57 = math.exp %56 : vector<16x16xf32>
    %cst_17 = arith.constant dense<0.000000e+00> : vector<16xf32>
    %58 = vector.multi_reduction <add>, %57, %cst_17 [1] : vector<16x16xf32> to vector<16xf32>
    %59 = vector.shape_cast %58 : vector<16xf32> to vector<16x1xf32>
    %60 = math.log %59 : vector<16x1xf32>
    %61 = arith.addf %54, %60 : vector<16x1xf32>
    %cst_18 = arith.constant 0.000000e+00 : f32
    %62 = vector.broadcast %cst_18 : f32 to vector<16x16xf32>
    %63 = arith.select %22, %52, %62 : vector<16x16xi1>, vector<16x16xf32>
    %64 = vector.shape_cast %63 : vector<16x16xf32> to vector<1x16x16xf32>
    %cst_19 = arith.constant dense<0.000000e+00> : vector<1xf32>
    %65 = vector.multi_reduction <add>, %64, %cst_19 [1, 2] : vector<1x16x16xf32> to vector<1xf32>
    %66 = vector.shape_cast %65 : vector<1xf32> to vector<1x1x1xf32>
    %67 = vector.extract %66[0, 0, 0] : f32 from vector<1x1x1xf32>
    %68 = vector.shape_cast %61 : vector<16x1xf32> to vector<1x16x1xf32>
    %cst_20 = arith.constant dense<0.000000e+00> : vector<1xf32>
    %69 = vector.multi_reduction <add>, %68, %cst_20 [1, 2] : vector<1x16x1xf32> to vector<1xf32>
    %70 = vector.shape_cast %69 : vector<1xf32> to vector<1x1x1xf32>
    %71 = vector.extract %70[0, 0, 0] : f32 from vector<1x1x1xf32>
    %72 = arith.subf %71, %67 : f32
    %cst_21 = arith.constant 1.600000e+01 : f32
    %73 = arith.divf %72, %cst_21 : f32
    %c0_22 = arith.constant 0 : index
    %c0_23 = arith.constant 0 : index
    %74 = memref.load %arg3[%c0_22, %c0_23] : memref<1x1xf32, #tpu.memory_space<smem>>
    memref.store %73, %arg3[%c0_22, %c0_23] : memref<1x1xf32, #tpu.memory_space<smem>>
    return
  }
}

</mosaic_0001>

<bundles_post_ra>
// kernel: frequency_aware_ntxent_loss.1
= control target key start
LH: loop header
LB: loop body
LE: loop exit
PB: predicated region body
PF: predicated region fallthrough
CT: control target
= control target key end

     0   :  { %vm19_vm0 = vcmask 261120   ;;  %s382_s0 = inlined_call_operand.vmem [shape: f32[8,32], index: 0, kind: input, shape index: {}]   ;;  %s383_s1 = inlined_call_operand.vmem [shape: f32[8,32], index: 1, kind: input, shape index: {}]   ;;  %s384_s2 = inlined_call_operand.vmem [shape: s32[16,5], index: 2, kind: input, shape index: {}]   ;;  %s385_s3 = inlined_call_operand.hbm [shape: f32[1,1], index: 3, kind: output, shape index: {}]  }
   0x1   :  { %v15_v0 = vld [vmem:[%s382_s0] sm:$0xff] }
   0x2   :  { %v16_v1 = vld [vmem:[%s383_s1] sm:$0xff] }
   0x3   :  { %8 = vsyncpa [#allocation3], 0  ;;  %v17_v2 = vmul.f32 %v15_v0, %v15_v0  ;;  %v18_v3 = vmul.f32 %v16_v1, %v16_v1  ;;  %v128_v6 = vld [vmem:[%s384_s2] sm:$0xff]  ;;  %v319_v7 = vmov 0   ;;  %v320_v8 = vmov 1   ;;  %v129_v9 = vld [vmem:[%s384_s2 + $0x8] sm:$0xff] }
   0x4   :  { %288 = vset.pattern.permute.xlu1 %v319_v7  ;;  %289 = vset.pattern.permute.xlu0 %v320_v8  ;;  %v321_v10 = vmov 4   ;;  %v322_v11 = vmov 2   ;;  %v323_v12 = vmov 3   ;;  %vm272_vm1 = vmpackc.low %vm19_vm0, %vm19_vm0  ;;  %v113_v28 = vlaneseq  ;;  %s307_s23 = scalar_lea.hbm %s385_s3, 16 }
   0x5   :  { %v20_v4 = vsel %vm19_vm0, %v17_v2, 0.0  ;;  %v23_v5 = vsel %vm19_vm0, %v18_v3, 0.0  ;;  %131 = vperm.xlu1 %288, %v128_v6   ;;  %v324_v32 = vmov 5.0   ;;  %vm184_vm14 = vcmask 130048   ;;  %p308_p0 = scmp.ne.s32.totalorder %s385_s3, %s307_s23  ;;  %p311_p1 = scmp.lt.u32.totalorder %s307_s23, %s385_s3 }
   0x6   :  { %21 = vadd.xlane.f32.xlu0 %v20_v4  ;;  %v117_v29 = vand.u32 127, %v113_v28  ;;  %v114_v38 = vshrl.u32 %v113_v28, 7 }
   0x7   :  { %p313_p2 = pnand %p311_p1, %p308_p0 }
   0x8   :  { %v115_v42 = vadd.s32 8, %v114_v38  ;;  %vm118_vm13 = vcmp.eq.s32.totalorder %v114_v38, %v117_v29  ;;  %vm127_vm15 = vcmp.eq.s32.totalorder %v117_v29, %v114_v38 }
   0x9   :  { %134 = vperm.xlu1 %288, %v129_v9  }
   0xa   :  { %24 = vadd.xlane.f32.xlu0 %v23_v5  ;;  %vm119_vm12 = vcmp.eq.s32.totalorder %v115_v42, %v117_v29 }
   0xd   :  { %290 = vset.pattern.permute.xlu1 %v320_v8 }
   0xe   :  { %144 = vperm.xlu1 %290, %v129_v9  }
  0x12   :  { %291 = vset.pattern.permute.xlu1 %v322_v11 }
  0x13   :  { %151 = vperm.xlu1 %291, %v128_v6  }
  0x17   :  { %154 = vperm.xlu1 %291, %v129_v9  }
  0x1b   :  { %292 = vset.pattern.permute.xlu1 %v323_v12 }
  0x1c   :  { %161 = vperm.xlu1 %292, %v128_v6  }
  0x20   :  { %141 = vperm.xlu0 %289, %v128_v6   ;;  %164 = vperm.xlu1 %292, %v129_v9  }
  0x24   :  { %294 = vset.pattern.permute.xlu0 %v321_v10  ;;  %293 = vset.pattern.permute.xlu1 %v321_v10 }
  0x25   :  { %171 = vperm.xlu1 %293, %v128_v6  }
  0x29   :  { %174 = vperm.xlu1 %293, %v129_v9  }
  0x84   :  { %v132_v22 = vpop.permute.xlu1 %131 }
  0x85   :  { %vm136_vm2 = vcmp.eq.s32.totalorder %v117_v29, %v132_v22 }
  0x86   :  { %v138_v33 = vsel %vm136_vm2, 15.0, %v324_v32 }
  0x88   :  { %v135_v23 = vpop.permute.xlu1 %134 }
  0x89   :  { %vm137_vm3 = vcmp.eq.s32.totalorder %v117_v29, %v135_v23 }
  0x8a   :  { %v139_v34 = vsel %vm137_vm3, 15.0, %v324_v32 }
  0x8d   :  { %v145_v24 = vpop.permute.xlu1 %144 }
  0x8e   :  { %vm147_vm4 = vcmp.eq.s32.totalorder %v117_v29, %v145_v24 }
  0x8f   :  { %v149_v36 = vsel %vm147_vm4, 15.0, %v139_v34 }
  0x92   :  { %v152_v25 = vpop.permute.xlu1 %151 }
  0x93   :  { %v22_v13 = vpop.xlane.xlu0 %21  ;;  %vm156_vm6 = vcmp.eq.s32.totalorder %v117_v29, %v152_v25 }
  0x94   :  { %v26_v14 = vmax.f32 %v22_v13, 1e-16 }
  0x96   :  { %295 = vrsqrt.f32 %v26_v14  ;;  %v155_v26 = vpop.permute.xlu1 %154 }
  0x97   :  { %v25_v15 = vpop.xlane.xlu0 %24  ;;  %vm157_vm7 = vcmp.eq.s32.totalorder %v117_v29, %v155_v26 }
  0x98   :  { %v27_v16 = vmax.f32 %v25_v15, 1e-16  ;;  %v159_v39 = vsel %vm157_vm7, 15.0, %v149_v36 }
  0x9a   :  { %297 = vrsqrt.f32 %v27_v16 }
  0x9b   :  { %v162_v27 = vpop.permute.xlu1 %161 }
  0x9c   :  { %vm166_vm8 = vcmp.eq.s32.totalorder %v117_v29, %v162_v27 }
  0x9f   :  { %v165_v30 = vpop.permute.xlu1 %164  ;;  %v142_v31 = vpop.permute.xlu0 %141 }
  0xa0   :  { %v296_v17 = vpop.eup %295  ;;  %vm146_vm5 = vcmp.eq.s32.totalorder %v117_v29, %v142_v31  ;;  %vm167_vm9 = vcmp.eq.s32.totalorder %v117_v29, %v165_v30 }
  0xa1   :  { %v30_v18 = vmul.f32 %v296_v17, %v15_v0  ;;  %v148_v37 = vsel %vm146_vm5, 15.0, %v138_v33  ;;  %v169_v43 = vsel %vm167_vm9, 15.0, %v159_v39 }
  0xa2   :  { %v158_v40 = vsel %vm156_vm6, 15.0, %v148_v37 }
  0xa3   :  { %268 = vmatprep.mubr.msk.f32.mxu0 %vm19_vm0, %v30_v18  ;;  %v168_v44 = vsel %vm166_vm8, 15.0, %v158_v40 }
  0xa4   :  { %v298_v19 = vpop.eup %297  ;;  %v172_v35 = vpop.permute.xlu1 %171 }
  0xa5   :  { %v31_v20 = vmul.f32 %v298_v19, %v16_v1  ;;  %vm176_vm10 = vcmp.eq.s32.totalorder %v117_v29, %v172_v35 }
  0xa6   :  { %v178_v47 = vsel %vm176_vm10, 15.0, %v168_v44 }
  0xa7   :  { %v271_v21 = vpack.c.bf16 %v31_v20, %v30_v18 }
  0xa8   :  { %v175_v41 = vpop.permute.xlu1 %174 }
  0xa9   :  { %273 = vmatprep.subr.msk.bf16.mxu0 %vm272_vm1, %v271_v21  ;;  %vm177_vm11 = vcmp.eq.s32.totalorder %v117_v29, %v175_v41 }
  0xaa   :  { %276 = vmatpush3.bf16.xpose.msk.msra.mxu0 %vm272_vm1, %v271_v21  ;;  %v179_v46 = vsel %vm177_vm11, 15.0, %v169_v43  ;;  %vm223_vm1 = vcmask 7168  }
  0xb1   :  { %269 = vmatmul.mubr.msk.f32.vlgmr.msra.gmra.mrb[0].mxu0 %vm19_vm0, %v31_v20  ;;  %vm126_vm0 = vcmp.eq.s32.totalorder %v117_v29, %v115_v42 }
 0x184   :  { %v270_v45 = vpop.f32.mrb[0].mxu0 }
 0x185   :  { %v181_v48 = vmul.f32 %v270_v45, %v179_v46  ;;  %v104_v49 = vpop.f32.mrb[1].mxu0 }
 0x186   :  { %v180_v50 = vmul.f32 %v178_v47, %v104_v49 }
 0x187   :  { %v183_v51 = vsel %vm119_vm12, -inf, %v181_v48 }
 0x188   :  { %v182_v52 = vsel %vm118_vm13, -inf, %v180_v50  ;;  %v188_v53 = vsel %vm184_vm14, %v183_v51, -inf  ;;  %v210_v54 = vsel %vm127_vm15, %v183_v51, 0.0 }
 0x189   :  { %189 = vmax.xlane.f32.xlu0 %v188_v53  ;;  %v185_v55 = vsel %vm184_vm14, %v182_v52, -inf  ;;  %v209_v56 = vsel %vm126_vm0, %v182_v52, 0.0  ;;  %v212_v57 = vsel %vm184_vm14, %v210_v54, 0.0 }
 0x18a   :  { %186 = vmax.xlane.f32.xlu1 %v185_v55  ;;  %v211_v58 = vsel %vm184_vm14, %v209_v56, 0.0 }
 0x18b   :  { %v213_v59 = vadd.f32 %v212_v57, %v211_v58 }
 0x216   :  { %v190_v60 = vpop.xlane.xlu0 %189 }
 0x217   :  { %v192_v61 = vsub.f32 %v183_v51, %v190_v60  ;;  %v187_v62 = vpop.xlane.xlu1 %186 }
 0x218   :  { %v191_v63 = vsub.f32 %v182_v52, %v187_v62 }
 0x219   :  { %v195_v0 = vmul.f32 1.442695, %v192_v61 }
 0x21a   :  { %v193_v1 = vmul.f32 1.442695, %v191_v63 }
 0x21c   :  { %299 = vpow2.f32 %v193_v1 }
 0x21d   :  { %301 = vpow2.f32 %v195_v0 }
 0x226   :  { %v300_v2 = vpop.eup %299 }
 0x227   :  { %v197_v3 = vsel %vm184_vm14, %v300_v2, 0.0  ;;  %v302_v4 = vpop.eup %301 }
 0x228   :  { %198 = vadd.xlane.f32.xlu1 %v197_v3  ;;  %v200_v5 = vsel %vm184_vm14, %v302_v4, 0.0 }
 0x22c   :  { %201 = vadd.xlane.f32.xlu1 %v200_v5 }
 0x230   :  { %214 = vadd.xlane.f32.xlu1 %v213_v59 }
 0x2b5   :  { %v199_v6 = vpop.xlane.xlu1 %198 }
 0x2b6   :  { %303 = vlog2.f32 %v199_v6 }
 0x2b9   :  { %v202_v7 = vpop.xlane.xlu1 %201 }
 0x2ba   :  { %305 = vlog2.f32 %v202_v7 }
 0x2bd   :  { %v215_v8 = vpop.xlane.xlu1 %214 }
 0x2be   :  { %v216_v9 = vrot.slane %v215_v8, 4 }
 0x2c0   :  { %v304_v10 = vpop.eup %303  ;;  %v217_v11 = vadd.f32 %v216_v9, %v215_v8 }
 0x2c1   :  { %v204_v12 = vmul.f32 0.6931472, %v304_v10 }
 0x2c2   :  { %v218_v13 = vrot.slane %v217_v11, 2 }
 0x2c3   :  { %v207_v17 = vadd.f32 %v204_v12, %v187_v62 }
 0x2c4   :  { %v306_v14 = vpop.eup %305  ;;  %v219_v15 = vadd.f32 %v218_v13, %v217_v11 }
 0x2c5   :  { %v206_v16 = vmul.f32 0.6931472, %v306_v14  ;;  %v224_v21 = vsel %vm223_vm1, %v207_v17, 0.0 }
 0x2c6   :  { %v220_v18 = vrot.slane %v219_v15, 1 }
 0x2c7   :  { %v208_v19 = vadd.f32 %v206_v16, %v190_v60 }
 0x2c8   :  { %v221_v20 = vadd.f32 %v220_v18, %v219_v15 }
 0x2c9   :  { %v225_v22 = vsel %vm223_vm1, %v208_v19, 0.0 }
 0x2ca   :  { %277 = vpush %v221_v20  ;;  %v226_v23 = vadd.f32 %v225_v22, %v224_v21 }
 0x2cc   :  { %227 = vadd.xlane.f32.xlu0 %v226_v23 }
 0x2fb   :  { %s278_s2 = spop %277 }
 0x359   :  { %v228_v24 = vpop.xlane.xlu0 %227 }
 0x35a   :  { %v229_v25 = vrot.slane %v228_v24, 4 }
 0x35c   :  { %v230_v26 = vadd.f32 %v229_v25, %v228_v24 }
 0x35e   :  { %v231_v27 = vrot.slane %v230_v26, 2 }
 0x360   :  { %v232_v28 = vadd.f32 %v231_v27, %v230_v26 }
 0x362   :  { %v233_v29 = vrot.slane %v232_v28, 1 }
 0x364   :  { %v234_v30 = vadd.f32 %v233_v29, %v232_v28 }
 0x366   :  { %279 = vpush %v234_v30 }
 0x397   :  { %s280_s18 = spop %279 }
 0x398   :  { %s236_s19 = ssub.f32 %s280_s18, %s278_s2 }
 0x39a   :  { %s239_s20 = smul.f32 0.0625, %s236_s19 }
 0x39c   :  { %241 = sst [smem:[#allocation2]] %s239_s20 }
 0x39d   :  { %316 = shalt.err (!%p313_p2)
}
 0x39e   :  { %s325_s28 = smov [#allocation2]  }
 0x39f   :  { %249 = dma.smem_to_hbm %s325_s28, 16, %s385_s3, [#allocation3]  }
 0x3a0   :  { %317 = dma.done.wait [#allocation3], 16  }
 0x3a1   :  { %318 = vsyncadd [#allocation3], 4294967280 }
 0x3a2   :  { %253 = sfence }
 0x3a3   :  { %254 = vsyncpa [#allocation3], 1 }

</bundles_post_ra>
